<compile_context>
chip_gen: v6e
topology: v6e:2x2x1
jax: 0.10.0
libtpu: 0.0.40
codegen_flags: <defaults>
</compile_context>

<pallas_src>
import jax
import jax.numpy as jnp
from jax.experimental import pallas as pl
from jax.experimental.pallas import tpu as pltpu

INPUT_SIZE = 1032
HIDDEN = 4                      # per-direction hidden size
NGATE = 6 * HIDDEN              # fused gate width: [i_f|i_b, o_f|o_b, g_f|g_b]
OUT_PAD = 128                   # lane-dense padded head output width


def _round_up(n, m):
    return ((n + m - 1) // m) * m


def rnn_kernel(x_ref, w_ref, b_ref, wo_ref, bo_ref, out_ref):
    # Fused bidirectional LSTM cell step (seq_len == 1, h0 == c0 == 0).
    x = x_ref[...].astype(jnp.bfloat16)                 # in-kernel cast (free filler)
    gates = jnp.dot(x, w_ref[...],
                    preferred_element_type=jnp.float32) + b_ref[...]   # (TB, 24) f32

    sig = jax.nn.sigmoid(gates[:, 0:4 * HIDDEN])        # [i_f|i_b, o_f|o_b] (TB, 16)
    g = jnp.tanh(gates[:, 4 * HIDDEN:6 * HIDDEN])       # [g_f|g_b]          (TB, 8)
    i_blk = sig[:, 0:2 * HIDDEN]
    o_blk = sig[:, 2 * HIDDEN:4 * HIDDEN]
    h = o_blk * jnp.tanh(i_blk * g)                     # (TB, 8) = concat(h_fwd, h_bwd)

    # Linear head as a second tiny MXU matmul; wo is zero-padded to 128 lanes
    # so the output store is lane-dense (no masked vst epilogue).
    out_ref[...] = jnp.dot(h, wo_ref[...],
                           preferred_element_type=jnp.float32) + bo_ref[...]


def rnn_forward(x, params, block_batch=1024):
    """x: (B, 1, 1032) float32 (batch_first, seq_len == 1). Returns (B, 2) f32."""
    B, T, F = x.shape
    assert T == 1 and F == INPUT_SIZE
    x2d = x.reshape(B, F)                               # metadata-only, stays f32

    # Batch tile: multiple of 8 sublanes, >= 2 grid steps when B allows
    # (dual-TC on v7x), capped so double-buffered f32 x tiles fit VMEM.
    TB = max(8, _round_up(-(-B // 2), 8))
    TB = min(TB, block_batch)
    grid = pl.cdiv(B, TB)                               # ragged last block is masked

    out = pl.pallas_call(
        rnn_kernel,
        out_shape=jax.ShapeDtypeStruct((B, OUT_PAD), jnp.float32),
        grid=(grid,),
        in_specs=[
            pl.BlockSpec((TB, F), lambda b: (b, 0)),          # x tile (pipelined)
            pl.BlockSpec((F, NGATE), lambda b: (0, 0)),       # fused LSTM weight (resident)
            pl.BlockSpec((1, NGATE), lambda b: (0, 0)),       # fused LSTM bias
            pl.BlockSpec((2 * HIDDEN, OUT_PAD), lambda b: (0, 0)),  # padded head weight
            pl.BlockSpec((1, OUT_PAD), lambda b: (0, 0)),     # padded head bias
        ],
        out_specs=pl.BlockSpec((TB, OUT_PAD), lambda b: (b, 0)),
        compiler_params=pltpu.CompilerParams(
            dimension_semantics=("parallel",),
            vmem_limit_bytes=32 * 1024 * 1024),
    )(x2d, params["w_lstm"], params["b_lstm"], params["w_out"], params["b_out"])
    return out[:, :2]


def init_params(key):
    """Deterministic init matching PyTorch LSTM/Linear shapes, then fused."""
    ks = jax.random.split(key, 8)
    bound_lstm = 1.0 / jnp.sqrt(HIDDEN)        # PyTorch LSTM init scale
    bound_lin = 1.0 / jnp.sqrt(2 * HIDDEN)     # PyTorch Linear init scale

    def u(k, shape, bound):
        return jax.random.uniform(k, shape, jnp.float32, -bound, bound)

    # PyTorch shapes: weight_ih (4H, F), biases (4H,). weight_hh multiplies
    # h0 == 0 and does not affect the output, so it is omitted.
    w_ih_f = u(ks[0], (4 * HIDDEN, INPUT_SIZE), bound_lstm)
    b_ih_f = u(ks[1], (4 * HIDDEN,), bound_lstm)
    b_hh_f = u(ks[2], (4 * HIDDEN,), bound_lstm)
    w_ih_b = u(ks[3], (4 * HIDDEN, INPUT_SIZE), bound_lstm)
    b_ih_b = u(ks[4], (4 * HIDDEN,), bound_lstm)
    b_hh_b = u(ks[5], (4 * HIDDEN,), bound_lstm)
    w_out = u(ks[6], (2, 2 * HIDDEN), bound_lin)   # PyTorch Linear (out, in)
    b_out = u(ks[7], (2,), bound_lin)

    bf = b_ih_f + b_hh_f
    bb = b_ih_b + b_hh_b

    def gate_w(w, idx):     # PyTorch gate order i(0), f(1), g(2), o(3)
        return w[idx * HIDDEN:(idx + 1) * HIDDEN, :]

    def gate_b(b, idx):
        return b[idx * HIDDEN:(idx + 1) * HIDDEN]

    # Fused columns: [i_fwd|i_bwd, o_fwd|o_bwd, g_fwd|g_bwd]; f-gate dropped.
    # Sigmoid gates (i, o) are contiguous -> one 16-lane sigmoid in-kernel.
    w_fused = jnp.concatenate([
        gate_w(w_ih_f, 0), gate_w(w_ih_b, 0),
        gate_w(w_ih_f, 3), gate_w(w_ih_b, 3),
        gate_w(w_ih_f, 2), gate_w(w_ih_b, 2),
    ], axis=0).T                                                # (1032, 24)
    b_fused = jnp.concatenate([
        gate_b(bf, 0), gate_b(bb, 0),
        gate_b(bf, 3), gate_b(bb, 3),
        gate_b(bf, 2), gate_b(bb, 2),
    ]).reshape(1, -1)                                           # (1, 24)

    # Head weight/bias zero-padded to 128 output lanes (lane-dense store).
    w_out_pad = jnp.zeros((2 * HIDDEN, OUT_PAD), jnp.float32).at[:, :2].set(w_out.T)
    b_out_pad = jnp.zeros((1, OUT_PAD), jnp.float32).at[:, :2].set(b_out.reshape(1, -1))

    return {
        "w_lstm": w_fused.astype(jnp.bfloat16),   # (1032, 24) bf16
        "b_lstm": b_fused,                        # (1, 24) f32
        "w_out": w_out_pad,                       # (8, 128) f32, cols 2..127 zero
        "b_out": b_out_pad,                       # (1, 128) f32, cols 2..127 zero
        # Raw PyTorch-shaped params kept only for the reference check.
        "_raw": {"w_ih_f": w_ih_f, "b_f": bf, "w_ih_b": w_ih_b, "b_b": bb,
                 "w_out": w_out, "b_out": b_out},
    }


def rnn_reference(x, params):
    """Pure-JAX reference following the original per-direction PyTorch math
    (i/f/g/o gate order, c0 = h0 = 0), using bf16-rounded x/W_ih to match the
    kernel's input precision."""
    raw = params["_raw"]
    x2d = x.reshape(x.shape[0], -1).astype(jnp.bfloat16).astype(jnp.float32)

    def cell(w_ih, b):
        w = w_ih.astype(jnp.bfloat16).astype(jnp.float32)
        g = x2d @ w.T + b
        i = jax.nn.sigmoid(g[:, 0 * HIDDEN:1 * HIDDEN])
        gg = jnp.tanh(g[:, 2 * HIDDEN:3 * HIDDEN])
        o = jax.nn.sigmoid(g[:, 3 * HIDDEN:4 * HIDDEN])
        c = i * gg                      # f * c0 drops out since c0 == 0
        return o * jnp.tanh(c)

    h = jnp.concatenate([cell(raw["w_ih_f"], raw["b_f"]),
                         cell(raw["w_ih_b"], raw["b_b"])], axis=-1)
    return h @ raw["w_out"].T + raw["b_out"].reshape(1, -1)


if __name__ == "__main__":
    key = jax.random.PRNGKey(0)
    k_x, k_p = jax.random.split(key)

    B = 100                                  # matches the original dataset batch
    x = jax.random.normal(k_x, (B, 1, INPUT_SIZE), dtype=jnp.float32)
    params = init_params(k_p)

    # Default block_batch; for B=100 this gives TB=56, a 2-step "parallel" grid.
    out = rnn_forward(x, params)
    out = jax.block_until_ready(out)

    ref = rnn_reference(x, params)
    assert out.shape == (B, 2)
    assert jnp.allclose(out, ref, atol=2e-3, rtol=2e-3), float(
        jnp.max(jnp.abs(out - ref)))

    print("KERNEL_OK")
</pallas_src>

<mosaic_0001>
module attributes {stable_mosaic.version = 11 : i64} {
  func.func @rnn_kernel(%arg0: i32, %arg1: memref<56x1032xf32, #tpu.memory_space<vmem>>, %arg2: memref<1032x24xbf16, #tpu.memory_space<vmem>>, %arg3: memref<1x24xf32, #tpu.memory_space<vmem>>, %arg4: memref<8x128xf32, #tpu.memory_space<vmem>>, %arg5: memref<1x128xf32, #tpu.memory_space<vmem>>, %arg6: memref<56x128xf32, #tpu.memory_space<vmem>>) attributes {dimension_semantics = [#tpu.dimension_semantics<parallel>], iteration_bounds = array<i64: 2>, scalar_prefetch = 0 : i64, scratch_operands = 0 : i64, tpu.core_type = #tpu.core_type<tc>, window_params = [{transform_indices = @transform_0, window_bounds = array<i64: 56, 1032>}, {pipeline_mode = #tpu.pipeline_mode<synchronous>, transform_indices = @transform_1, window_bounds = array<i64: 1032, 24>}, {pipeline_mode = #tpu.pipeline_mode<synchronous>, transform_indices = @transform_2, window_bounds = array<i64: 1, 24>}, {pipeline_mode = #tpu.pipeline_mode<synchronous>, transform_indices = @transform_3, window_bounds = array<i64: 8, 128>}, {pipeline_mode = #tpu.pipeline_mode<synchronous>, transform_indices = @transform_4, window_bounds = array<i64: 1, 128>}, {transform_indices = @transform_5, window_bounds = array<i64: 56, 128>}]} {
    %c0 = arith.constant 0 : index
    %c0_0 = arith.constant 0 : index
    %0 = vector.load %arg1[%c0, %c0_0] : memref<56x1032xf32, #tpu.memory_space<vmem>>, vector<56x1032xf32>
    %1 = arith.truncf %0 : vector<56x1032xf32> to vector<56x1032xbf16>
    %c0_1 = arith.constant 0 : index
    %c0_2 = arith.constant 0 : index
    %2 = vector.load %arg2[%c0_1, %c0_2] : memref<1032x24xbf16, #tpu.memory_space<vmem>>, vector<1032x24xbf16>
    %cst = arith.constant dense<0.000000e+00> : vector<56x24xf32>
    %3 = tpu.matmul %1, %2, %cst {dimension_numbers = #tpu.dot_dimension_numbers<[1], [0], [0], [1], [0, 0, 1, 1], [], []>} : vector<56x1032xbf16>, vector<1032x24xbf16>, vector<56x24xf32> -> vector<56x24xf32>
    %c0_3 = arith.constant 0 : index
    %c0_4 = arith.constant 0 : index
    %4 = vector.load %arg3[%c0_3, %c0_4] : memref<1x24xf32, #tpu.memory_space<vmem>>, vector<1x24xf32>
    %5 = vector.broadcast %4 : vector<1x24xf32> to vector<56x24xf32>
    %6 = arith.addf %3, %5 : vector<56x24xf32>
    %7 = vector.extract_strided_slice %6 {offsets = [0, 0], sizes = [56, 16], strides = [1, 1]} : vector<56x24xf32> to vector<56x16xf32>
    %8 = arith.negf %7 : vector<56x16xf32>
    %9 = math.exp %8 : vector<56x16xf32>
    %cst_5 = arith.constant 1.000000e+00 : f32
    %10 = vector.broadcast %cst_5 : f32 to vector<56x16xf32>
    %11 = arith.addf %10, %9 : vector<56x16xf32>
    %12 = arith.divf %10, %11 : vector<56x16xf32>
    %13 = vector.extract_strided_slice %6 {offsets = [0, 16], sizes = [56, 8], strides = [1, 1]} : vector<56x24xf32> to vector<56x8xf32>
    %14 = math.tanh %13 : vector<56x8xf32>
    %15 = vector.extract_strided_slice %12 {offsets = [0, 0], sizes = [56, 8], strides = [1, 1]} : vector<56x16xf32> to vector<56x8xf32>
    %16 = vector.extract_strided_slice %12 {offsets = [0, 8], sizes = [56, 8], strides = [1, 1]} : vector<56x16xf32> to vector<56x8xf32>
    %17 = arith.mulf %15, %14 : vector<56x8xf32>
    %18 = math.tanh %17 : vector<56x8xf32>
    %19 = arith.mulf %16, %18 : vector<56x8xf32>
    %c0_6 = arith.constant 0 : index
    %c0_7 = arith.constant 0 : index
    %20 = vector.load %arg4[%c0_6, %c0_7] : memref<8x128xf32, #tpu.memory_space<vmem>>, vector<8x128xf32>
    %cst_8 = arith.constant dense<0.000000e+00> : vector<56x128xf32>
    %21 = tpu.matmul %19, %20, %cst_8 {dimension_numbers = #tpu.dot_dimension_numbers<[1], [0], [0], [1], [0, 0, 1, 1], [], []>} : vector<56x8xf32>, vector<8x128xf32>, vector<56x128xf32> -> vector<56x128xf32>
    %c0_9 = arith.constant 0 : index
    %c0_10 = arith.constant 0 : index
    %22 = vector.load %arg5[%c0_9, %c0_10] : memref<1x128xf32, #tpu.memory_space<vmem>>, vector<1x128xf32>
    %23 = vector.broadcast %22 : vector<1x128xf32> to vector<56x128xf32>
    %24 = arith.addf %21, %23 : vector<56x128xf32>
    %c0_11 = arith.constant 0 : index
    %c0_12 = arith.constant 0 : index
    %25 = vector.load %arg6[%c0_11, %c0_12] : memref<56x128xf32, #tpu.memory_space<vmem>>, vector<56x128xf32>
    tpu.vector_store %arg6[%c0_11, %c0_12], %24 {strides = array<i32>} : memref<56x128xf32, #tpu.memory_space<vmem>>, vector<56x128xf32>,
    return
  }
  func.func @transform_0(%arg0: i32) -> (i32, i32) {
    %c0_i32 = arith.constant 0 : i32
    %c0_i32_0 = arith.constant 0 : i32
    return %arg0, %c0_i32 : i32, i32
  }
  func.func @transform_1(%arg0: i32) -> (i32, i32) {
    %c0_i32 = arith.constant 0 : i32
    %c0_i32_0 = arith.constant 0 : i32
    %c0_i32_1 = arith.constant 0 : i32
    return %c0_i32, %c0_i32_0 : i32, i32
  }
  func.func @transform_2(%arg0: i32) -> (i32, i32) {
    %c0_i32 = arith.constant 0 : i32
    %c0_i32_0 = arith.constant 0 : i32
    %c0_i32_1 = arith.constant 0 : i32
    return %c0_i32, %c0_i32_0 : i32, i32
  }
  func.func @transform_3(%arg0: i32) -> (i32, i32) {
    %c0_i32 = arith.constant 0 : i32
    %c0_i32_0 = arith.constant 0 : i32
    %c0_i32_1 = arith.constant 0 : i32
    return %c0_i32, %c0_i32_0 : i32, i32
  }
  func.func @transform_4(%arg0: i32) -> (i32, i32) {
    %c0_i32 = arith.constant 0 : i32
    %c0_i32_0 = arith.constant 0 : i32
    %c0_i32_1 = arith.constant 0 : i32
    return %c0_i32, %c0_i32_0 : i32, i32
  }
  func.func @transform_5(%arg0: i32) -> (i32, i32) {
    %c0_i32 = arith.constant 0 : i32
    %c0_i32_0 = arith.constant 0 : i32
    return %arg0, %c0_i32 : i32, i32
  }
}

</mosaic_0001>

<bundles_post_ra>
// kernel: tpu_custom_call.1
= control target key start
LH: loop header
LB: loop body
LE: loop exit
PB: predicated region body
PF: predicated region fallthrough
CT: control target
= control target key end

     0   :  { %10 = vsyncpa [#allocation3], 0  ;;  %s2717_s0 = inlined_call_operand.hbm [shape: f32[100,1032], index: 0, kind: input, shape index: {}]   ;;  %s2718_s1 = inlined_call_operand.vmem [shape: bf16[1032,24], index: 1, kind: input, shape index: {}]   ;;  %s2719_s2 = inlined_call_operand.vmem [shape: f32[1,24], index: 2, kind: input, shape index: {}]   ;;  %s2720_s3 = inlined_call_operand.vmem [shape: f32[8,128], index: 3, kind: input, shape index: {}]   ;;  %s2721_s4 = inlined_call_operand.vmem [shape: f32[1,128], index: 4, kind: input, shape index: {}]   ;;  %s2722_s5 = inlined_call_operand.hbm [shape: f32[100,128], index: 5, kind: output, shape index: {}]  }
   0x1   :  { %12 = vsyncpa [#allocation3 + $0x1], 0 }
   0x2   :  { %13 = vsyncpa [#allocation4], 0 }
   0x3   :  { %15 = vsyncpa [#allocation4 + $0x1], 0  ;;  %s2209_s18 = smov 0   ;;  %s2211_s19 = smov 0  }
   0x4   :  { %s2213_s20 = smov 0   ;;  %s2215_s21 = smov 0  }
   0x5 LB: > { %s2230_s22 = sadd.s32 4294967295, %s2166_s21   ;;  %s1591_s23 = sadd.s32 4294967294, %s2166_s21   ;;  %s2166_s21 = sphi %s2215_s21, %s2734_s21   ;;  %s2162_s20 = sphi %s2213_s20, %s2733_s20   ;;  %s2158_s19 = sphi %s2211_s19, %s2732_s19   ;;  %s2154_s18 = sphi %s2209_s18, %s2731_s18  }
   0x6   : > { %s2234_s24 = sadd.s32 1, %s2166_s21   ;;  %s28_s25 = sadd.s32 1, %s2162_s20 }
   0x7   : > { %s25_s26 = ssub.s32 %s2166_s21, %s2234_s24  ;;  %p35_p0 = scmp.ne.s32.totalorder %s2162_s20, %s2158_s19 }
   0x8   : > { %p26_p1 = scmp.eq.s32.totalorder %s25_s26, 0  ;;  %p36_p2 = scmp.eq.s32.totalorder %s2166_s21, 0 }
   0x9   : > { %p41_p3 = scmp.ne.s32.totalorder %s2158_s19, %s2154_s18  ;;  %p42_p4 = scmp.eq.s32.totalorder %s2230_s22, 0 }
   0xa   : > { %s2246_s27 = scalar_select %p26_p1, %s2162_s20, %s28_s25  }
   0xb   : > { %p37_p5 = por %p36_p2, %p35_p0  ;;  %p2248_p6 = por %p42_p4, %p41_p3 }
   0xc   : > { %p149_p7 = scmp.eq.s32.totalorder %s2230_s22, 1  ;;  %p155_p8 = scmp.eq.s32.totalorder %s1591_s23, 1 }
   0xd   : > { %p2723_p11 = scmp.ge.s32.totalorder %s2166_s21, 2 }
   0xe   : > { %p2253_p9 = por %p149_p7, %p35_p0  ;;  %p2257_p10 = por %p155_p8, %p41_p3 }
   0xf   : > { %183 = sbr.rel (%p2723_p11) target bundleno = 55 (0x37), region = 32 }
  0x10   : > { %s2726_s30 = scalar_select %p2257_p10, 1, 0 }
  0x14   : > { %186 = sbr.rel (!%p37_p5) target bundleno = 55 (0x37), region = 36  ;;  %s187_s6 = sand.u32 (%p37_p5), 1, %s2162_s20  }
  0x15   : > { %s192_s7 = smul.u32 (%p37_p5), 7, %s2166_s21  ;;  %s2269_s12 = scalar_lea.sflag (%p37_p5), [#allocation3], %s187_s6 }
  0x16   : > { %s1902_s8 = smul.u32 (%p37_p5), 504, %s187_s6 }
  0x17   : > { %s193_s9 = ssub.s32 (%p37_p5), 13, %s192_s7 }
  0x18   : > { %p194_p12 = scmp.lt.s32.totalorder (%p37_p5), %s193_s9, 7  ;;  %s191_s13 = scalar_lea.vmem (%p37_p5), [#allocation2], %s1902_s8 }
  0x1a   : > { %s2736_s9 = smov (!%p194_p12, %s193_s9), 7 }
  0x1b   : > { %s2266_s10 = smul.u32 1152, %s2736_s9 }
  0x1d   : > { %s199_s11 = ssub.s32 8064, %s2266_s10 }
  0x1e   : > { %200 = vsyncadd %s2269_s12, %s199_s11  ;;  %p1596_p13 = scmp.ne.s32.totalorder %s2266_s10, 0  ;;  %s1912_s14 = smul.u32 8064, %s2166_s21 }
  0x1f   : > { %s206_s15 = sshll.u32 %s191_s13, 4  ;;  %s2080_s7 = scalar_lea.hbm %s2717_s0, 14976  ;;  %s2279_s15 = int_to_ptr.vmem [resolvable:$true] %s206_s15 }
  0x20   : > { %s2277_s23 = scalar_lea.hbm %s2717_s0, %s1912_s14 }
  0x21   : > { %s2076_s25 = scalar_lea.hbm %s2277_s23, %s2266_s10  ;;  %p2081_p3 = scmp.lt.s32.totalorder %s2277_s23, %s2717_s0 }
  0x22   : > { %p2077_p0 = scmp.ne.s32.totalorder %s2277_s23, %s2076_s25  ;;  %p2082_p4 = scmp.lt.s32.totalorder %s2080_s7, %s2076_s25 }
  0x24   : > { %p2078_p1 = pnand %p2077_p0, %p1596_p13  ;;  %p2083_p5 = por %p2082_p4, %p2081_p3 }
  0x26   : > { %p2079_p2 = pneg %p2078_p1 }
  0x28   : > { %p2084_p7 = pnand %p2083_p5, %p2079_p2 }
  0x2a   : > { %2087 = shalt.err (!%p2084_p7)
}
  0x2b   : > { %s2088_s11 = scalar_lea.vmem %s2279_s15, %s2266_s10  ;;  %s2168_s13 = smov [#allocation2]  }
  0x2c   : > { %p2089_p8 = scmp.ne.s32.totalorder %s2279_s15, %s2088_s11  ;;  %s2092_s14 = sshll.u32 %s2168_s13, 4  ;;  %s2093_s14 = int_to_ptr.vmem [resolvable:$false] %s2092_s14 }
  0x2d   : > { %s2094_s16 = scalar_lea.vmem %s2093_s14, 16128  ;;  %p2095_p1 = scmp.lt.s32.totalorder %s2279_s15, %s2093_s14 }
  0x2e   : > { %p2090_p12 = pnand %p2089_p8, %p1596_p13  ;;  %p2096_p11 = scmp.lt.s32.totalorder %s2094_s16, %s2088_s11 }
  0x30   : > { %p2091_p0 = pneg %p2090_p12  ;;  %p2097_p10 = por %p2096_p11, %p2095_p1 }
  0x32   : > { %p2098_p3 = pnand %p2097_p10, %p2091_p0 }
  0x34   : > { %2101 = shalt.err (!%p2098_p3)
}
  0x35   : > { %s2169_s17 = smov 1152   ;;  %s2170_s25 = smov 72  }
  0x36   : > { %212 = dma.hbm_to_vmem [thread:$0]  (%p1596_p13), %s2277_s23, %s2266_s10, %s2279_s15, %s2269_s12, %s2169_s17, %s2169_s17, %s2170_s25  }
  0x37 PF: > { %p1599_p2 = scmp.ge.s32.totalorder %s2166_s21, 1  ;;  %p214_p4 = scmp.lt.s32.totalorder %s2166_s21, 3 }
  0x39   : > { %p215_p5 = pnand %p1599_p2, %p214_p4 }
  0x3b   : > { %218 = sbr.rel (%p215_p5) target bundleno = 987 (0x3db), region = 40 }
  0x40   : > { %s2308_s26 = sand.u32 1, %s2158_s19  }
  0x41   : > { %s1904_s6 = smul.u32 504, %s2308_s26  ;;  %s221_s7 = scalar_lea.sflag [#allocation3], %s2308_s26 }
  0x43   : > { %s2312_s8 = scalar_lea.vmem [#allocation2], %s1904_s6 }
  0x44   : > { %2145 = dma.done.wait (%p2248_p6), %s221_s7, 8064  }
  0x45   : > { %2147 = vsyncadd (%p2248_p6), %s221_s7, 4294959232  ;;  %v1955_v0 = vld [vmem:[%s2718_s1 + $0x78] sm:$0xff]   ;;  %v1959_v4 = vld [vmem:[%s2718_s1 + $0x70] sm:$0xff]   ;;  %vm898_vm0 = vcmask 1043456   ;;  %vm885_vm1 = vcmask 64512   ;;  %s2172_s13 = smov 8  }
  0x46   : > { %v1956_v1 = vld [vmem:[%s2718_s1 + $0x38] sm:$0xff]   ;;  %1693 = vmatprep.subr.bf16.mxu0 %v1955_v0  ;;  %v1960_v5 = vld [vmem:[%s2718_s1 + $0x30] sm:$0xff]   ;;  %v1963_v8 = vld [vmem:[%s2718_s1 + $0x68] sm:$0xff]   ;;  %vm2174_vm2 = vmmov 0   ;;  %s2175_s16 = smov 120   ;;  %s1905_s17 = smul.u32 56, %s2308_s26 }
  0x47   : > { %v1957_v2 = vld [vmem:[%s2718_s1 + $0xf8] sm:$0xff]   ;;  %1694 = vmatpush3.bf16.msra.mxu0 %v1956_v1  ;;  %v1961_v6 = vld [vmem:[%s2718_s1 + $0xf0] sm:$0xff]   ;;  %v1964_v9 = vld [vmem:[%s2718_s1 + $0x28] sm:$0xff]   ;;  %s1499_s10 = scalar_lea.sflag [#allocation4], %s2308_s26  ;;  %s1506_s12 = smul.u32 (%p2253_p9), 7, %s2230_s22 }
  0x48   : > { %v1958_v3 = vld [vmem:[%s2718_s1 + $0xb8] sm:$0xff]   ;;  %1733 = vmatprep.subr.bf16.mxu1 %v1957_v2  ;;  %1695 = vmatprep.subr.bf16.mxu0 %v1959_v4  ;;  %v1962_v7 = vld [vmem:[%s2718_s1 + $0xb0] sm:$0xff]   ;;  %v1965_v10 = vld [vmem:[%s2718_s1 + $0xe8] sm:$0xff]   ;;  %s2646_s7 = scalar_lea.vmem [#allocation5], %s1905_s17 }
  0x49   : > { %1734 = vmatpush3.bf16.msra.mxu1 %v1958_v3  ;;  %v1966_v11 = vld [vmem:[%s2718_s1 + $0xa8] sm:$0xff]   ;;  %v1967_v12 = vld [vmem:[%s2718_s1 + $0x60] sm:$0xff]   ;;  %v1971_v16 = vld [vmem:[%s2718_s1 + $0x58] sm:$0xff]   ;;  %s1507_s15 = ssub.s32 (%p2253_p9), 13, %s1506_s12 }
  0x4a   : > { %1735 = vmatprep.subr.bf16.mxu1 %v1961_v6  ;;  %v1968_v13 = vld [vmem:[%s2718_s1 + $0x20] sm:$0xff]   ;;  %v1972_v17 = vld [vmem:[%s2718_s1 + $0x18] sm:$0xff]   ;;  %v1975_v20 = vld [vmem:[%s2718_s1 + $0x50] sm:$0xff]   ;;  %p1508_p6 = scmp.lt.s32.totalorder (%p2253_p9), %s1507_s15, 7 }
  0x4b   : > { %1696 = vmatpush3.bf16.msra.mxu0 %v1960_v5  ;;  %v1969_v14 = vld [vmem:[%s2718_s1 + $0xe0] sm:$0xff]   ;;  %v1973_v18 = vld [vmem:[%s2718_s1 + $0xd8] sm:$0xff]   ;;  %v1976_v21 = vld [vmem:[%s2718_s1 + $0x10] sm:$0xff]  }
  0x4c   : > { %1697 = vmatprep.subr.bf16.mxu0 %v1963_v8  ;;  %v1970_v15 = vld [vmem:[%s2718_s1 + $0xa0] sm:$0xff]   ;;  %v1974_v19 = vld [vmem:[%s2718_s1 + $0x98] sm:$0xff]   ;;  %v1977_v22 = vld [vmem:[%s2718_s1 + $0xd0] sm:$0xff]  }
  0x4d   : > { %1736 = vmatpush3.bf16.msra.mxu1 %v1962_v7  ;;  %v1978_v23 = vld [vmem:[%s2718_s1 + $0x90] sm:$0xff]   ;;  %v1979_v24 = vld [vmem:[%s2718_s1 + $0x48] sm:$0xff]   ;;  %v1983_v28 = vld [vmem:[%s2718_s1 + $0x40] sm:$0xff]  }
  0x4e   : > { %1737 = vmatprep.subr.bf16.mxu1 %v1965_v10  ;;  %v1980_v25 = vld [vmem:[%s2718_s1 + $0x8] sm:$0xff]   ;;  %v1984_v29 = vld [vmem:[%s2718_s1] sm:$0xff]   ;;  %v1987_v38 = vld [vmem:[%s2718_s1 + $0x178] sm:$0xff]  }
  0x4f   : > { %1698 = vmatpush3.bf16.msra.mxu0 %v1964_v9  ;;  %v1981_v26 = vld [vmem:[%s2718_s1 + $0xc8] sm:$0xff]   ;;  %v1985_v30 = vld [vmem:[%s2718_s1 + $0xc0] sm:$0xff]   ;;  %v266_v39 = vld [vmem:[%s2312_s8 + $0x18] sm:$0xff] }
  0x50   : > { %1699 = vmatprep.subr.bf16.mxu0 %v1967_v12  ;;  %v1982_v27 = vld [vmem:[%s2718_s1 + $0x88] sm:$0xff]   ;;  %v1986_v34 = vld [vmem:[%s2718_s1 + $0x80] sm:$0xff]   ;;  %v1988_v42 = vld [vmem:[%s2718_s1 + $0x138] sm:$0xff]  }
  0x51   : > { %1738 = vmatpush3.bf16.msra.mxu1 %v1966_v11  ;;  %v264_v31 = vld [vmem:[%s2312_s8 + $0x8] sm:$0xff]  ;;  %v273_v32 = vld [vmem:[%s2312_s8 + $0x50] sm:$0xff]  ;;  %v263_v35 = vld [vmem:[%s2312_s8] sm:$0xff] }
  0x52   : > { %1739 = vmatprep.subr.bf16.mxu1 %v1969_v14  ;;  %v327_v33 = vpack.c.bf16 %v273_v32, %v264_v31  ;;  %v272_v36 = vld [vmem:[%s2312_s8 + $0x48] sm:$0xff]  ;;  %v275_v40 = vld [vmem:[%s2312_s8 + $0x60] sm:$0xff]  ;;  %v265_v43 = vld [vmem:[%s2312_s8 + $0x10] sm:$0xff] }
  0x53   : > { %1700 = vmatpush3.bf16.msra.mxu0 %v1968_v13  ;;  %v326_v37 = vpack.c.bf16 %v272_v36, %v263_v35  ;;  %v329_v41 = vpack.c.bf16 %v275_v40, %v266_v39  ;;  %v274_v44 = vld [vmem:[%s2312_s8 + $0x58] sm:$0xff]  ;;  %v291_v52 = vld [vmem:[%s2312_s8 + $0xe0] sm:$0xff]  ;;  %v281_v55 = vld [vmem:[%s2312_s8 + $0x90] sm:$0xff] }
  0x54   : > { %1701 = vmatprep.subr.bf16.mxu0 %v1971_v16  ;;  %934 = vmatprep.mubr.bf16.mxu0 %v327_v33  ;;  %v328_v45 = vpack.c.bf16 %v274_v44, %v265_v43  ;;  %v1989_v46 = vld [vmem:[%s2718_s1 + $0x1f8] sm:$0xff]   ;;  %v1991_v48 = vld [vmem:[%s2718_s1 + $0x170] sm:$0xff]   ;;  %v1995_v58 = vld [vmem:[%s2718_s1 + $0x168] sm:$0xff]  }
  0x55   : > { %1740 = vmatpush3.bf16.msra.mxu1 %v1970_v15  ;;  %998 = vmatprep.mubr.bf16.mxu1 %v329_v41  ;;  %v1990_v47 = vld [vmem:[%s2718_s1 + $0x1b8] sm:$0xff]   ;;  %v1992_v49 = vld [vmem:[%s2718_s1 + $0x130] sm:$0xff]   ;;  %v284_v59 = vld [vmem:[%s2312_s8 + $0xa8] sm:$0xff] }
  0x56   : > { %1741 = vmatprep.subr.bf16.mxu1 %v1973_v18  ;;  %v1993_v50 = vld [vmem:[%s2718_s1 + $0x1f0] sm:$0xff]   ;;  %v1996_v62 = vld [vmem:[%s2718_s1 + $0x128] sm:$0xff]   ;;  %v283_v63 = vld [vmem:[%s2312_s8 + $0xa0] sm:$0xff] }
  0x57   : > { %1702 = vmatpush3.bf16.msra.mxu0 %v1972_v17  ;;  %v282_v51 = vld [vmem:[%s2312_s8 + $0x98] sm:$0xff]  ;;  %v293_v60 = vld [vmem:[%s2312_s8 + $0xf0] sm:$0xff]  ;;  %v292_v0 = vld [vmem:[%s2312_s8 + $0xe8] sm:$0xff] }
  0x58   : > { %1703 = vmatprep.subr.bf16.mxu0 %v1975_v20  ;;  %v336_v53 = vpack.c.bf16 %v291_v52, %v282_v51  ;;  %v1994_v54 = vld [vmem:[%s2718_s1 + $0x1b0] sm:$0xff]   ;;  %v338_v61 = vpack.c.bf16 %v293_v60, %v284_v59  ;;  %v337_v1 = vpack.c.bf16 %v292_v0, %v283_v63  ;;  %v1997_v2 = vld [vmem:[%s2718_s1 + $0x1e8] sm:$0xff]   ;;  %v1999_v4 = vld [vmem:[%s2718_s1 + $0x160] sm:$0xff]  }
  0x59   : > { %1742 = vmatpush3.bf16.msra.mxu1 %v1974_v19  ;;  %v290_v56 = vld [vmem:[%s2312_s8 + $0xd8] sm:$0xff]  ;;  %v1998_v3 = vld [vmem:[%s2718_s1 + $0x1a8] sm:$0xff]   ;;  %v2000_v5 = vld [vmem:[%s2718_s1 + $0x120] sm:$0xff]  }
  0x5a   : > { %1743 = vmatprep.subr.bf16.mxu1 %v1977_v22  ;;  %v335_v57 = vpack.c.bf16 %v290_v56, %v281_v55  ;;  %v2001_v6 = vld [vmem:[%s2718_s1 + $0x1e0] sm:$0xff]   ;;  %v309_v8 = vld [vmem:[%s2312_s8 + $0x170] sm:$0xff]  ;;  %v2003_v14 = vld [vmem:[%s2718_s1 + $0x158] sm:$0xff]  }
  0x5b   : > { %1704 = vmatpush3.bf16.msra.mxu0 %v1976_v21  ;;  %v300_v7 = vld [vmem:[%s2312_s8 + $0x128] sm:$0xff]  ;;  %v299_v11 = vld [vmem:[%s2312_s8 + $0x120] sm:$0xff]  ;;  %v302_v15 = vld [vmem:[%s2312_s8 + $0x138] sm:$0xff] }
  0x5c   : > { %1705 = vmatprep.subr.bf16.mxu0 %v1979_v24  ;;  %v345_v9 = vpack.c.bf16 %v309_v8, %v300_v7  ;;  %v2002_v10 = vld [vmem:[%s2718_s1 + $0x1a0] sm:$0xff]   ;;  %v2004_v18 = vld [vmem:[%s2718_s1 + $0x118] sm:$0xff]   ;;  %v301_v19 = vld [vmem:[%s2312_s8 + $0x130] sm:$0xff] }
  0x5d   : > { %1744 = vmatpush3.bf16.msra.mxu1 %v1978_v23  ;;  %v308_v12 = vld [vmem:[%s2312_s8 + $0x168] sm:$0xff]  ;;  %v311_v16 = vld [vmem:[%s2312_s8 + $0x180] sm:$0xff]  ;;  %v310_v20 = vld [vmem:[%s2312_s8 + $0x178] sm:$0xff] }
  0x5e   : > { %1745 = vmatprep.subr.bf16.mxu1 %v1981_v26  ;;  %v344_v13 = vpack.c.bf16 %v308_v12, %v299_v11  ;;  %v347_v17 = vpack.c.bf16 %v311_v16, %v302_v15  ;;  %v346_v21 = vpack.c.bf16 %v310_v20, %v301_v19  ;;  %v2005_v22 = vld [vmem:[%s2718_s1 + $0x1d8] sm:$0xff]   ;;  %v2007_v24 = vld [vmem:[%s2718_s1 + $0x150] sm:$0xff]   ;;  %v2011_v32 = vld [vmem:[%s2718_s1 + $0x148] sm:$0xff]  }
  0x5f   : > { %1706 = vmatpush3.bf16.msra.mxu0 %v1980_v25  ;;  %v2006_v23 = vld [vmem:[%s2718_s1 + $0x198] sm:$0xff]   ;;  %v2008_v25 = vld [vmem:[%s2718_s1 + $0x110] sm:$0xff]   ;;  %v320_v33 = vld [vmem:[%s2312_s8 + $0x1c8] sm:$0xff] }
  0x60   : > { %1707 = vmatprep.subr.bf16.mxu0 %v1983_v28  ;;  %v2009_v26 = vld [vmem:[%s2718_s1 + $0x1d0] sm:$0xff]   ;;  %v2012_v35 = vld [vmem:[%s2718_s1 + $0x108] sm:$0xff]   ;;  %v319_v36 = vld [vmem:[%s2312_s8 + $0x1c0] sm:$0xff] }
  0x61   : > { %1746 = vmatpush3.bf16.msra.mxu1 %v1982_v27  ;;  %v318_v27 = vld [vmem:[%s2312_s8 + $0x1b8] sm:$0xff]  ;;  %v2014_v39 = vld [vmem:[%s2718_s1 + $0x188] sm:$0xff]   ;;  %v2015_v40 = vld [vmem:[%s2718_s1 + $0x140] sm:$0xff]  }
  0x62   : > { %1747 = vmatprep.subr.bf16.mxu1 %v1985_v30  ;;  %v354_v28 = vpack.c.bf16 %v318_v27, %v318_v27  ;;  %v317_v30 = vld [vmem:[%s2312_s8 + $0x1b0] sm:$0xff]  ;;  %v2016_v41 = vld [vmem:[%s2718_s1 + $0x100] sm:$0xff]   ;;  %v270_v51 = vld [vmem:[%s2312_s8 + $0x38] sm:$0xff] }
  0x63   : > { %1708 = vmatpush3.bf16.msra.mxu0 %v1984_v29  ;;  %v2010_v29 = vld [vmem:[%s2718_s1 + $0x190] sm:$0xff]   ;;  %v353_v31 = vpack.c.bf16 %v317_v30, %v317_v30  ;;  %v268_v43 = vld [vmem:[%s2312_s8 + $0x28] sm:$0xff]  ;;  %v279_v52 = vld [vmem:[%s2312_s8 + $0x80] sm:$0xff] }
  0x64   : > { %1773 = vmatprep.subr.bf16.mxu0 %v1987_v38  ;;  %v2013_v38 = vld [vmem:[%s2718_s1 + $0x1c8] sm:$0xff]   ;;  %v278_v55 = vld [vmem:[%s2312_s8 + $0x78] sm:$0xff]  ;;  %v295_v59 = vld [vmem:[%s2312_s8 + $0x100] sm:$0xff] }
  0x65   : > { %1748 = vmatpush3.bf16.msra.mxu1 %v1986_v34  ;;  %v356_v34 = vpack.c.bf16 %v320_v33, %v320_v33  ;;  %v277_v44 = vld [vmem:[%s2312_s8 + $0x70] sm:$0xff]  ;;  %v286_v56 = vld [vmem:[%s2312_s8 + $0xb8] sm:$0xff]  ;;  %v288_v63 = vld [vmem:[%s2312_s8 + $0xc8] sm:$0xff] }
  0x66   : > { %935 = vmatmul.mubr.bf16.vlgmr.msra.gmra.mxu0 %v326_v37  ;;  %1813 = vmatprep.subr.bf16.mxu1 %v1989_v46  ;;  %v355_v37 = vpack.c.bf16 %v319_v36, %v319_v36  ;;  %v2018_v46 = vld [vmem:[%s2718_s1 + $0x180] sm:$0xff]   ;;  %v285_v60 = vld [vmem:[%s2312_s8 + $0xb0] sm:$0xff]  ;;  %v306_v7 = vld [vmem:[%s2312_s8 + $0x158] sm:$0xff] }
  0x67   : > { %1774 = vmatpush3.bf16.msra.mxu0 %v1988_v42  ;;  %942 = vmatprep.mubr.bf16.mxu0 %v336_v53  ;;  %v2017_v42 = vld [vmem:[%s2718_s1 + $0x1c0] sm:$0xff]   ;;  %v333_v53 = vpack.c.bf16 %v279_v52, %v270_v51  ;;  %v297_v0 = vld [vmem:[%s2312_s8 + $0x110] sm:$0xff]  ;;  %v314_v16 = vld [vmem:[%s2312_s8 + $0x198] sm:$0xff] }
  0x68   : > { %999 = vmatmul.mubr.bf16.vlgmr.msra.gmra.mxu1 %v328_v45  ;;  %1775 = vmatprep.subr.bf16.mxu0 %v1991_v48  ;;  %v331_v45 = vpack.c.bf16 %v277_v44, %v268_v43  ;;  %v276_v48 = vld [vmem:[%s2312_s8 + $0x68] sm:$0xff]  ;;  %v315_v8 = vld [vmem:[%s2312_s8 + $0x1a0] sm:$0xff]  ;;  %v305_v15 = vld [vmem:[%s2312_s8 + $0x150] sm:$0xff] }
  0x69   : > { %1814 = vmatpush3.bf16.msra.mxu1 %v1990_v47  ;;  %1006 = vmatprep.mubr.bf16.mxu1 %v338_v61  ;;  %v267_v47 = vld [vmem:[%s2312_s8 + $0x20] sm:$0xff]  ;;  %v340_v61 = vpack.c.bf16 %v295_v59, %v286_v56  ;;  %v351_v11 = vpack.c.bf16 %v315_v8, %v306_v7  ;;  %v350_v20 = vpack.c.bf16 %v314_v16, %v305_v15  ;;  %v298_v30 = vld [vmem:[%s2312_s8 + $0x118] sm:$0xff] }
  0x6a   : > { %1815 = vmatprep.subr.bf16.mxu1 %v1993_v50  ;;  %v2019_v50 = vld [vmem:[%s2718_s1 + $0x200] ss:$0 sps:$4 sm:$0xff]  }
  0x6b   : > { %1776 = vmatpush3.bf16.msra.mxu0 %v1992_v49  ;;  %v330_v49 = vpack.c.bf16 %v276_v48, %v267_v47  ;;  %v303_v12 = vld [vmem:[%s2312_s8 + $0x140] sm:$0xff] }
  0x6c   : > { %1777 = vmatprep.subr.bf16.mxu0 %v1995_v58 }
  0x6d   : > { %1816 = vmatpush3.bf16.msra.mxu1 %v1994_v54  ;;  %v269_v54 = vld [vmem:[%s2312_s8 + $0x30] sm:$0xff] }
  0x6e   : > { %943 = vmatmul.mubr.bf16.gmra.mxu0 %v335_v57  ;;  %1817 = vmatprep.subr.bf16.mxu1 %v1997_v2  ;;  %v900_v57 = vsel %vm898_vm0, %v2019_v50, 0  ;;  %v332_v58 = vpack.c.bf16 %v278_v55, %v269_v54  ;;  %v304_v2 = vld [vmem:[%s2312_s8 + $0x148] sm:$0xff] }
  0x6f   : > { %1778 = vmatpush3.bf16.msra.mxu0 %v1996_v62  ;;  %950 = vmatprep.mubr.bf16.mxu0 %v345_v9  ;;  %v294_v62 = vld [vmem:[%s2312_s8 + $0xf8] sm:$0xff] }
  0x70   : > { %1007 = vmatmul.mubr.bf16.gmra.mxu1 %v337_v1  ;;  %1779 = vmatprep.subr.bf16.mxu0 %v1999_v4  ;;  %v342_v1 = vpack.c.bf16 %v297_v0, %v288_v63  ;;  %v287_v4 = vld [vmem:[%s2312_s8 + $0xc0] sm:$0xff] }
  0x71   : > { %1818 = vmatpush3.bf16.msra.mxu1 %v1998_v3  ;;  %1014 = vmatprep.mubr.bf16.mxu1 %v347_v17  ;;  %v313_v3 = vld [vmem:[%s2312_s8 + $0x190] sm:$0xff] }
  0x72   : > { %1819 = vmatprep.subr.bf16.mxu1 %v2001_v6  ;;  %v339_v6 = vpack.c.bf16 %v294_v62, %v285_v60  ;;  %v349_v9 = vpack.c.bf16 %v313_v3, %v304_v2 }
  0x73   : > { %1780 = vmatpush3.bf16.msra.mxu0 %v2000_v5  ;;  %v296_v5 = vld [vmem:[%s2312_s8 + $0x108] sm:$0xff] }
  0x74   : > { %1781 = vmatprep.subr.bf16.mxu0 %v2003_v14  ;;  %v322_v14 = vld [vmem:[%s2312_s8 + $0x1d8] sm:$0xff] }
  0x75   : > { %1820 = vmatpush3.bf16.msra.mxu1 %v2002_v10  ;;  %v341_v10 = vpack.c.bf16 %v296_v5, %v287_v4  ;;  %v358_v19 = vpack.c.bf16 %v322_v14, %v322_v14 }
  0x76   : > { %951 = vmatmul.mubr.bf16.gmra.mxu0 %v344_v13  ;;  %1821 = vmatprep.subr.bf16.mxu1 %v2005_v22  ;;  %v312_v13 = vld [vmem:[%s2312_s8 + $0x188] sm:$0xff]  ;;  %v321_v22 = vld [vmem:[%s2312_s8 + $0x1d0] sm:$0xff] }
  0x77   : > { %1782 = vmatpush3.bf16.msra.mxu0 %v2004_v18  ;;  %958 = vmatprep.mubr.bf16.mxu0 %v354_v28  ;;  %v348_v17 = vpack.c.bf16 %v312_v13, %v303_v12  ;;  %v324_v18 = vld [vmem:[%s2312_s8 + $0x1e8] sm:$0xff] }
  0x78   : > { %1015 = vmatmul.mubr.bf16.gmra.mxu1 %v346_v21  ;;  %1783 = vmatprep.subr.bf16.mxu0 %v2007_v24  ;;  %v360_v21 = vpack.c.bf16 %v324_v18, %v324_v18  ;;  %v280_v24 = vld [vmem:[%s2312_s8 + $0x88] sm:$0xff] }
  0x79   : > { %1822 = vmatpush3.bf16.msra.mxu1 %v2006_v23  ;;  %1022 = vmatprep.mubr.bf16.mxu1 %v356_v34  ;;  %v271_v23 = vld [vmem:[%s2312_s8 + $0x40] sm:$0xff] }
  0x7a   : > { %1823 = vmatprep.subr.bf16.mxu1 %v2009_v26  ;;  %v357_v26 = vpack.c.bf16 %v321_v22, %v321_v22  ;;  %v334_v27 = vpack.c.bf16 %v280_v24, %v271_v23 }
  0x7b   : > { %1784 = vmatpush3.bf16.msra.mxu0 %v2008_v25  ;;  %v323_v25 = vld [vmem:[%s2312_s8 + $0x1e0] sm:$0xff] }
  0x7c   : > { %1785 = vmatprep.subr.bf16.mxu0 %v2011_v32  ;;  %v359_v28 = vpack.c.bf16 %v323_v25, %v323_v25  ;;  %v316_v32 = vld [vmem:[%s2312_s8 + $0x1a8] sm:$0xff] }
  0x7d   : > { %1824 = vmatpush3.bf16.msra.mxu1 %v2010_v29  ;;  %v289_v29 = vld [vmem:[%s2312_s8 + $0xd0] sm:$0xff] }
  0x7e   : > { %959 = vmatmul.mubr.bf16.gmra.mxu0 %v353_v31  ;;  %1825 = vmatprep.subr.bf16.mxu1 %v2013_v38  ;;  %v307_v31 = vld [vmem:[%s2312_s8 + $0x160] sm:$0xff]  ;;  %v343_v33 = vpack.c.bf16 %v298_v30, %v289_v29 }
  0x7f   : > { %1786 = vmatpush3.bf16.msra.mxu0 %v2012_v35  ;;  %1062 = vmatprep.mubr.bf16.mxu0 %v331_v45  ;;  %v352_v34 = vpack.c.bf16 %v316_v32, %v307_v31  ;;  %v325_v35 = vld [vmem:[%s2312_s8 + $0x1f0] sm:$0xff]  ;;  %v2583_v38 = vld [vmem:[%s2719_s2] ss:$0 sm:$0xff]  ;;  %s2171_s8 = smov 112  }
  0x80   : > { %1023 = vmatmul.mubr.bf16.gmra.mxu1 %v355_v37  ;;  %1787 = vmatprep.subr.bf16.mxu0 %v2015_v40  ;;  %v361_v36 = vpack.c.bf16 %v325_v35, %v325_v35 }
  0x81   : > { %1826 = vmatpush3.bf16.msra.mxu1 %v2014_v39  ;;  %1126 = vmatprep.mubr.bf16.mxu1 %v333_v53 }
  0x82   : > { %1827 = vmatprep.subr.bf16.mxu1 %v2017_v42 }
  0x83   : > { %1788 = vmatpush3.bf16.msra.mxu0 %v2016_v41 }
  0x84   : > { %1901 = vmatprep.subr.msk.bf16.mxu0 %vm898_vm0, %v2019_v50 }
  0x85   : > { %1828 = vmatpush3.bf16.msra.mxu1 %v2018_v46 }
  0x86   : > { %1063 = vmatmul.mubr.bf16.vlgmr.msra.gmra.mxu0 %v330_v49 }
  0x87   : > { %1867 = vmatpush3.bf16.msra.mxu0 %v900_v57  ;;  %1070 = vmatprep.mubr.bf16.mxu0 %v340_v61 }
  0x88   : > { %1127 = vmatmul.mubr.bf16.vlgmr.msra.gmra.mxu1 %v332_v58 }
  0x89   : > { %1134 = vmatprep.mubr.bf16.mxu1 %v342_v1 }
  0x8e   : > { %1071 = vmatmul.mubr.bf16.gmra.mxu0 %v339_v6 }
  0x8f   : > { %1078 = vmatprep.mubr.bf16.mxu0 %v349_v9 }
  0x90   : > { %1135 = vmatmul.mubr.bf16.gmra.mxu1 %v341_v10 }
  0x91   : > { %1142 = vmatprep.mubr.bf16.mxu1 %v351_v11 }
  0x96   : > { %1079 = vmatmul.mubr.bf16.gmra.mxu0 %v348_v17 }
  0x97   : > { %1086 = vmatprep.mubr.bf16.mxu0 %v358_v19 }
  0x98   : > { %1143 = vmatmul.mubr.bf16.gmra.mxu1 %v350_v20 }
  0x99   : > { %1150 = vmatprep.mubr.bf16.mxu1 %v360_v21 }
  0x9e   : > { %1087 = vmatmul.mubr.bf16.gmra.mxu0 %v357_v26 }
  0x9f   : > { %1868 = vmatprep.mubr.msk.bf16.mxu0 %vm885_vm1, %v334_v27 }
  0xa0   : > { %1151 = vmatmul.mubr.bf16.gmra.mxu1 %v359_v28 }
  0xa6   : > { %1869 = vmatmul.mubr.msk.bf16.vlgmr.msra.gmra.mxu0 %vm885_vm1, %v343_v33 }
  0xa7   : > { %1872 = vmatprep.mubr.msk.bf16.mxu0 %vm885_vm1, %v352_v34 }
  0xae   : > { %1873 = vmatmul.mubr.msk.bf16.gmra.mxu0 %vm885_vm1, %v361_v36 }
 0x126   : > { %v1709_v37 = vpop.f32.mrf.mxu0 }
 0x128   : > { %v1710_v39 = vpop.f32.mrf.mxu0  ;;  %v1749_v41 = vpop.f32.mrf.mxu1 }
 0x129   : > { %v1711_v40 = vadd.f32 %v1710_v39, %v1709_v37 }
 0x12a   : > { %v1712_v42 = vpop.f32.mrf.mxu0  ;;  %v1750_v44 = vpop.f32.mrf.mxu1 }
 0x12b   : > { %v937_v43 = vadd.f32 %v1711_v40, %v2583_v38  ;;  %v1751_v45 = vadd.f32 %v1750_v44, %v1749_v41 }
 0x12c   : > { %v1713_v46 = vpop.f32.mrf.mxu0  ;;  %v1752_v47 = vpop.f32.mrf.mxu1 }
 0x12d   : > { %v2586_v48 = vadd.f32 %v1751_v45, %v937_v43  ;;  %v1714_v32 = vadd.f32 %v1713_v46, %v1712_v42 }
 0x12e   : > { %v1715_v49 = vpop.f32.mrf.mxu0  ;;  %v1753_v50 = vpop.f32.mrf.mxu1 }
 0x12f   : > { %v940_v41 = vadd.f32 %v1714_v32, %v2583_v38  ;;  %v1754_v43 = vadd.f32 %v1753_v50, %v1752_v47 }
 0x130   : > { %v1716_v51 = vpop.f32.mrf.mxu0  ;;  %v1755_v52 = vpop.f32.mrf.mxu1 }
 0x131   : > { %v1717_v37 = vadd.f32 %v1716_v51, %v1715_v49 }
 0x132   : > { %v1718_v53 = vpop.f32.mrf.mxu0  ;;  %v1756_v54 = vpop.f32.mrf.mxu1 }
 0x133   : > { %v945_v42 = vadd.f32 %v1717_v37, %v2583_v38  ;;  %v1757_v46 = vadd.f32 %v1756_v54, %v1755_v52 }
 0x134   : > { %v1719_v55 = vpop.f32.mrf.mxu0  ;;  %v1758_v56 = vpop.f32.mrf.mxu1 }
 0x135   : > { %v1720_v31 = vadd.f32 %v1719_v55, %v1718_v53  ;;  %v1004_v55 = vadd.f32 %v1754_v43, %v940_v41 }
 0x136   : > { %v1759_v57 = vpop.f32.mrf.mxu1  ;;  %v1721_v58 = vpop.f32.mrf.mxu0 }
 0x137   : > { %v948_v39 = vadd.f32 %v1720_v31, %v2583_v38  ;;  %v1760_v40 = vadd.f32 %v1759_v57, %v1758_v56 }
 0x138   : > { %v1722_v59 = vpop.f32.mrf.mxu0  ;;  %v1761_v60 = vpop.f32.mrf.mxu1 }
 0x139   : > { %v1723_v44 = vadd.f32 %v1722_v59, %v1721_v58  ;;  %v1012_v53 = vadd.f32 %v1760_v40, %v948_v39 }
 0x13a   : > { %v1724_v61 = vpop.f32.mrf.mxu0  ;;  %v1762_v62 = vpop.f32.mrf.mxu1 }
 0x13b   : > { %v953_v49 = vadd.f32 %v1723_v44, %v2583_v38  ;;  %v1763_v51 = vadd.f32 %v1762_v62, %v1761_v60 }
 0x13c   : > { %v1725_v63 = vpop.f32.mrf.mxu0  ;;  %v2588_v0 = vpop.f32.mrf.mxu1 }
 0x13d   : > { %v1726_v31 = vadd.f32 %v1725_v63, %v1724_v61 }
 0x13e   : > { %v2590_v1 = vpop.f32.mrf.mxu1  ;;  %v2592_v2 = vpop.f32.mrf.mxu0 }
 0x13f   : > { %v956_v52 = vadd.f32 %v1726_v31, %v2583_v38  ;;  %v1766_v60 = vadd.f32 %v2590_v1, %v2588_v0 }
 0x140   : > { %v2594_v3 = vpop.f32.mrf.mxu0  ;;  %v2596_v4 = vpop.f32.mrf.mxu1 }
 0x141   : > { %v1729_v54 = vadd.f32 %v2594_v3, %v2592_v2  ;;  %v1020_v39 = vadd.f32 %v1766_v60, %v956_v52 }
 0x142   : > { %v1730_v5 = vpop.f32.mrf.mxu0  ;;  %v2598_v6 = vpop.f32.mrf.mxu1 }
 0x143   : > { %v1769_v2 = vadd.f32 %v2598_v6, %v2596_v4 }
 0x144   : > { %v1731_v7 = vpop.f32.mrf.mxu0  ;;  %v1770_v8 = vpop.f32.mrf.mxu1 }
 0x146   : > { %v1771_v9 = vpop.f32.mrf.mxu1  ;;  %v2600_v10 = vpop.f32.mrf.mxu0 }
 0x148   : > { %v2602_v11 = vpop.f32.mrf.mxu0  ;;  %v2604_v12 = vpop.f32.mrf.mxu1 }
 0x14a   : > { %v1792_v13 = vpop.f32.mrf.mxu0  ;;  %v2606_v14 = vpop.f32.mrf.mxu1 }
 0x14b   : > { %2727 = vst [vmem:[#allocation8_spill] sm:$0xff] %v2606_v14 }
 0x14c   : > { %v1793_v15 = vpop.f32.mrf.mxu0  ;;  %v1832_v16 = vpop.f32.mrf.mxu1 }
 0x14d   : > { %v1794_v8 = vadd.f32 %v1793_v15, %v1792_v13  ;;  %v1009_v15 = vadd.f32 %v1757_v46, %v945_v42 }
 0x14e   : > { %v1795_v17 = vpop.f32.mrf.mxu0  ;;  %v1833_v18 = vpop.f32.mrf.mxu1 }
 0x14f   : > { %v1068_v58 = vadd.f32 %v1794_v8, %v1004_v55  ;;  %v1834_v59 = vadd.f32 %v1833_v18, %v1832_v16  ;;  %v1791_v16 = vadd.f32 %v2602_v11, %v2600_v10 }
 0x150   : > { %v1796_v19 = vpop.f32.mrf.mxu0  ;;  %v1835_v20 = vpop.f32.mrf.mxu1 }
 0x151   : > { %v1797_v32 = vadd.f32 %v1796_v19, %v1795_v17  ;;  %v1132_v18 = vadd.f32 %v1834_v59, %v1068_v58 }
 0x152   : > { %v1798_v21 = vpop.f32.mrf.mxu0  ;;  %v1836_v22 = vpop.f32.mrf.mxu1 }
 0x153   : > { %v1073_v61 = vadd.f32 %v1797_v32, %v1009_v15  ;;  %v1837_v62 = vadd.f32 %v1836_v22, %v1835_v20  ;;  %v1065_v20 = vadd.f32 %v1791_v16, %v2586_v48  ;;  %v2728_v22 = vld [vmem:[#allocation8_spill] sm:$0xff] }
 0x154   : > { %v1799_v23 = vpop.f32.mrf.mxu0  ;;  %v1838_v24 = vpop.f32.mrf.mxu1  ;;  %v1831_v10 = vadd.f32 %v2728_v22, %v2604_v12 }
 0x155   : > { %v1800_v7 = vadd.f32 %v1799_v23, %v1798_v21  ;;  %v1137_v0 = vadd.f32 %v1837_v62, %v1073_v61 }
 0x156   : > { %v1801_v25 = vpop.f32.mrf.mxu0  ;;  %v1839_v26 = vpop.f32.mrf.mxu1  ;;  %v1129_v44 = vadd.f32 %v1831_v10, %v1065_v20 }
 0x157   : > { %v1076_v47 = vadd.f32 %v1800_v7, %v1012_v53  ;;  %v1840_v50 = vadd.f32 %v1839_v26, %v1838_v24 }
 0x158   : > { %v1802_v27 = vpop.f32.mrf.mxu0  ;;  %v1841_v28 = vpop.f32.mrf.mxu1 }
 0x159   : > { %v1803_v23 = vadd.f32 %v1802_v27, %v1801_v25  ;;  %v1140_v63 = vadd.f32 %v1840_v50, %v1076_v47  ;;  %v961_v27 = vadd.f32 %v1729_v54, %v2583_v38 }
 0x15a   : > { %v1804_v29 = vpop.f32.mrf.mxu0  ;;  %v1842_v30 = vpop.f32.mrf.mxu1 }
 0x15b   : > { %v1843_v24 = vadd.f32 %v1842_v30, %v1841_v28  ;;  %v1025_v38 = vadd.f32 %v1769_v2, %v961_v27 }
 0x15c   : > { %v1805_v33 = vpop.f32.mrf.mxu0  ;;  %v1844_v34 = vpop.f32.mrf.mxu1 }
 0x15d   : > { %v1806_v25 = vadd.f32 %v1805_v33, %v1804_v29 }
 0x15e   : > { %v1807_v35 = vpop.f32.mrf.mxu0  ;;  %v1845_v36 = vpop.f32.mrf.mxu1 }
 0x15f   : > { %v1084_v28 = vadd.f32 %v1806_v25, %v1020_v39  ;;  %v1846_v29 = vadd.f32 %v1845_v36, %v1844_v34 }
 0x160   : > { %v1808_v45 = vpop.f32.mrf.mxu0  ;;  %v1847_v5 = vpop.f32.mrf.mxu1 }
 0x161   : > { %v1809_v11 = vadd.f32 %v1808_v45, %v1807_v35  ;;  %v1148_v48 = vadd.f32 %v1846_v29, %v1084_v28 }
 0x162   : > { %v1810_v9 = vpop.f32.mrf.mxu0  ;;  %v1848_v14 = vpop.f32.mrf.mxu1 }
 0x163   : > { %v1017_v9 = vadd.f32 %v1763_v51, %v953_v49  ;;  %v1089_v6 = vadd.f32 %v1809_v11, %v1025_v38  ;;  %v1849_v43 = vadd.f32 %v1848_v14, %v1847_v5 }
 0x164   : > { %v1811_v56 = vpop.f32.mrf.mxu0  ;;  %v1850_v57 = vpop.f32.mrf.mxu1 }
 0x165   : > { %v1081_v19 = vadd.f32 %v1803_v23, %v1017_v9  ;;  %v1153_v45 = vadd.f32 %v1849_v43, %v1089_v6 }
 0x166   : > { %v1870_v21 = vpop.f32.mrf.mxu0  ;;  %v1851_v13 = vpop.f32.mrf.mxu1 }
 0x167   : > { %v1201_v30 = vadd.f32 %v1870_v21, %v1137_v0  ;;  %v1145_v33 = vadd.f32 %v1843_v24, %v1081_v19 }
 0x168   : > { %v1192_v37 = vpop.f32.mrf.mxu0 }
 0x169   : > { %v1193_v8 = vadd.f32 %v1192_v37, %v1129_v44  ;;  %v1672_v31 = vmul.f32 -1.442695, %v1201_v30 }
 0x16a   : > { %v1871_v17 = vpop.f32.mrf.mxu0 }
 0x16b   : > { %v1204_v26 = vadd.f32 %v1871_v17, %v1140_v63  ;;  %v1670_v32 = vmul.f32 -1.442695, %v1193_v8 }
 0x16c   : > { %v1195_v3 = vpop.f32.mrf.mxu0 }
 0x16d   : > { %v1196_v1 = vadd.f32 %v1195_v3, %v1132_v18  ;;  %2020 = vtanh.f32 %v1204_v26  ;;  %v1673_v51 = vmul.f32 -1.442695, %v1204_v26 }
 0x16e   : > { %v1874_v40 = vpop.f32.mrf.mxu0 }
 0x16f   : > { %2022 = vtanh.f32 %v1196_v1  ;;  %v1217_v34 = vadd.f32 %v1874_v40, %v1153_v45  ;;  %v1671_v49 = vmul.f32 -1.442695, %v1196_v1 }
 0x170   : > { %v1208_v41 = vpop.f32.mrf.mxu0  ;;  %2024 = vtanh.f32 %v1201_v30 }
 0x171   : > { %v1209_v4 = vadd.f32 %v1208_v41, %v1145_v33  ;;  %v1676_v47 = vmul.f32 -1.442695, %v1217_v34  ;;  %v1348_v33 = vld [vmem:[%s2720_s3] sm:$0xff]  ;;  %v2173_v41 = vmov 0.0  }
 0x172   : > { %v1875_v7 = vpop.f32.mrf.mxu0  ;;  %1899 = vmatprep.subr.mxu1 %v2173_v41  ;;  %1881 = vmatprep.mubr.msk.f32.mxu1 %vm2174_vm2, %v2173_v41 }
 0x173   : > { %2026 = vtanh.f32 %v1209_v4  ;;  %v1674_v56 = vmul.f32 -1.442695, %v1209_v4  ;;  %1900 = vmatpush3.msra.mxu1 %v1348_v33  ;;  %1876 = vmatprep.subr.mxu0 %v2173_v41 }
 0x174   : > { %v1211_v12 = vpop.f32.mrf.mxu0  ;;  %1877 = vmatpush3.msra.mxu0 %v1348_v33  ;;  %1878 = vmatprep.mubr.msk.f32.mxu0 %vm2174_vm2, %v2173_v41 }
 0x175   : > { %v1212_v35 = vadd.f32 %v1211_v12, %v1148_v48 }
 0x177   : > { %2028 = vtanh.f32 %v1212_v35  ;;  %v1675_v57 = vmul.f32 -1.442695, %v1212_v35 }
 0x178   : > { %2030 = vtanh.f32 %v1193_v8 }
 0x179   : > { %2032 = vtanh.f32 %v1217_v34 }
 0x17a   : > { %v2021_v36 = vpop.eup %2020  ;;  %2034 = vpow2.f32 %v1671_v49 }
 0x17b   : > { %1284 = vrot.lane.b32.xlu1 %v2021_v36, %s2171_s8  ;;  %2036 = vpow2.f32 %v1673_v51 }
 0x17c   : > { %v2023_v42 = vpop.eup %2022  ;;  %2038 = vpow2.f32 %v1672_v31 }
 0x17d   : > { %1280 = vrot.lane.b32.xlu0 %v2023_v42, %s2171_s8  ;;  %v2025_v46 = vpop.eup %2024  ;;  %2040 = vpow2.f32 %v1674_v56 }
 0x17e   : > { %2042 = vpow2.f32 %v1675_v57 }
 0x17f   : > { %2044 = vpow2.f32 %v1670_v32 }
 0x180   : > { %v2027_v14 = vpop.eup %2026  ;;  %2046 = vpow2.f32 %v1676_v47 }
 0x181   : > { %1286 = vrot.lane.b32.xlu1 %v2027_v14, %s2171_s8  ;;  %1282 = vrot.lane.b32.xlu0 %v2025_v46, %s2171_s8 }
 0x184   : > { %v2029_v5 = vpop.eup %2028 }
 0x185   : > { %v2031_v53 = vpop.eup %2030  ;;  %1288 = vrot.lane.b32.xlu0 %v2029_v5, %s2171_s8 }
 0x186   : > { %1278 = vrot.lane.b32.xlu1 %v2031_v53, %s2171_s8  ;;  %v2033_v55 = vpop.eup %2032 }
 0x187   : > { %v2035_v50 = vpop.eup %2034 }
 0x188   : > { %v2037_v58 = vpop.eup %2036  ;;  %v1244_v59 = vadd.f32 1.0, %v2035_v50 }
 0x189   : > { %1290 = vrot.lane.b32.xlu0 %v2033_v55, %s2171_s8  ;;  %v2039_v21 = vpop.eup %2038  ;;  %v1246_v13 = vadd.f32 1.0, %v2037_v58  ;;  %v1677_v58 = vld [vmem:[%s2721_s4] ss:$0 sm:$0xff] }
 0x18a   : > { %v2041_v15 = vpop.eup %2040  ;;  %v1245_v23 = vadd.f32 1.0, %v2039_v21  ;;  %2048 = vrcp.f32 %v1244_v59 }
 0x18b   : > { %v2043_v9 = vpop.eup %2042  ;;  %2050 = vrcp.f32 %v1246_v13  ;;  %v1247_v52 = vadd.f32 1.0, %v2041_v15 }
 0x18c   : > { %v2045_v54 = vpop.eup %2044  ;;  %2052 = vrcp.f32 %v1245_v23  ;;  %v1248_v37 = vadd.f32 1.0, %v2043_v9 }
 0x18d   : > { %v2047_v60 = vpop.eup %2046  ;;  %v1243_v61 = vadd.f32 1.0, %v2045_v54  ;;  %2054 = vrcp.f32 %v1247_v52 }
 0x18e   : > { %v1249_v62 = vadd.f32 1.0, %v2047_v60  ;;  %2056 = vrcp.f32 %v1248_v37 }
 0x18f   : > { %2058 = vrcp.f32 %v1243_v61 }
 0x190   : > { %2060 = vrcp.f32 %v1249_v62 }
 0x197   : > { %v2049_v63 = vpop.eup %2048 }
 0x198   : > { %v2051_v19 = vpop.eup %2050 }
 0x199   : > { %v2053_v25 = vpop.eup %2052 }
 0x19a   : > { %v2055_v3 = vpop.eup %2054 }
 0x19b   : > { %v2057_v39 = vpop.eup %2056 }
 0x19c   : > { %v2059_v10 = vpop.eup %2058 }
 0x19d   : > { %v2061_v11 = vpop.eup %2060 }
 0x1ed   : > { %v1285_v16 = vpop.permute.xlu1 %1284 }
 0x1ee   : > { %v1302_v24 = vmul.f32 %v2051_v19, %v1285_v16 }
 0x1ef   : > { %v1281_v17 = vpop.permute.xlu0 %1280 }
 0x1f0   : > { %v1300_v18 = vmul.f32 %v2049_v63, %v1281_v17 }
 0x1f2   : > { %2062 = vtanh.f32 %v1300_v18 }
 0x1f3   : > { %v1287_v26 = vpop.permute.xlu1 %1286  ;;  %v1283_v27 = vpop.permute.xlu0 %1282  ;;  %2064 = vtanh.f32 %v1302_v24 }
 0x1f4   : > { %v1301_v2 = vmul.f32 %v2053_v25, %v1283_v27  ;;  %v1303_v0 = vmul.f32 %v2055_v3, %v1287_v26 }
 0x1f6   : > { %2066 = vtanh.f32 %v1301_v2 }
 0x1f7   : > { %v1289_v1 = vpop.permute.xlu0 %1288 }
 0x1f8   : > { %v1304_v20 = vmul.f32 %v2057_v39, %v1289_v1  ;;  %v1279_v22 = vpop.permute.xlu1 %1278 }
 0x1f9   : > { %v1299_v40 = vmul.f32 %v2059_v10, %v1279_v22 }
 0x1fa   : > { %2068 = vtanh.f32 %v1304_v20 }
 0x1fb   : > { %2070 = vtanh.f32 %v1303_v0  ;;  %v1291_v28 = vpop.permute.xlu0 %1290 }
 0x1fc   : > { %v1305_v29 = vmul.f32 %v2061_v11, %v1291_v28 }
 0x1fe   : > { %2072 = vtanh.f32 %v1305_v29 }
 0x1ff   : > { %v2063_v30 = vpop.eup %2062  ;;  %2074 = vtanh.f32 %v1299_v40 }
 0x200   : > { %1322 = vrot.lane.b32.xlu1 %v2063_v30, %s2172_s13  ;;  %v2065_v38 = vpop.eup %2064 }
 0x203   : > { %v2067_v4 = vpop.eup %2066 }
 0x204   : > { %1326 = vrot.lane.b32.xlu1 %v2065_v38, %s2172_s13  ;;  %1324 = vrot.lane.b32.xlu0 %v2067_v4, %s2172_s13 }
 0x207   : > { %v2069_v6 = vpop.eup %2068 }
 0x208   : > { %v2071_v43 = vpop.eup %2070  ;;  %1330 = vrot.lane.b32.xlu1 %v2069_v6, %s2172_s13 }
 0x209   : > { %1328 = vrot.lane.b32.xlu0 %v2071_v43, %s2172_s13 }
 0x20b   : > { %v2073_v44 = vpop.eup %2072 }
 0x20c   : > { %v2075_v7 = vpop.eup %2074  ;;  %1332 = vrot.lane.b32.xlu1 %v2073_v44, %s2172_s13 }
 0x20d   : > { %1320 = vrot.lane.b32.xlu0 %v2075_v7, %s2172_s13 }
 0x272   : > { %v1323_v48 = vpop.permute.xlu1 %1322 }
 0x273   : > { %v1342_v8 = vmul.f32 %v2049_v63, %v1323_v48 }
 0x275   : > { %1365 = vrot.lane.b32.xlu0 %v1342_v8, %s2175_s16 }
 0x276   : > { %v1327_v12 = vpop.permute.xlu1 %1326  ;;  %v1325_v35 = vpop.permute.xlu0 %1324 }
 0x277   : > { %v1344_v45 = vmul.f32 %v2051_v19, %v1327_v12  ;;  %v1343_v34 = vmul.f32 %v2053_v25, %v1325_v35 }
 0x279   : > { %1369 = vrot.lane.b32.xlu0 %v1344_v45, %s2175_s16  ;;  %1367 = vrot.lane.b32.xlu1 %v1343_v34, %s2175_s16 }
 0x27a   : > { %v1331_v36 = vpop.permute.xlu1 %1330 }
 0x27b   : > { %v1329_v42 = vpop.permute.xlu0 %1328  ;;  %v1346_v46 = vmul.f32 %v2057_v39, %v1331_v36 }
 0x27c   : > { %v1345_v14 = vmul.f32 %v2055_v3, %v1329_v42 }
 0x27d   : > { %1373 = vrot.lane.b32.xlu0 %v1346_v46, %s2175_s16 }
 0x27e   : > { %1371 = vrot.lane.b32.xlu1 %v1345_v14, %s2175_s16  ;;  %v1333_v5 = vpop.permute.xlu1 %1332 }
 0x27f   : > { %v1347_v53 = vmul.f32 %v2061_v11, %v1333_v5  ;;  %v1321_v55 = vpop.permute.xlu0 %1320 }
 0x280   : > { %v1341_v49 = vmul.f32 %v2059_v10, %v1321_v55 }
 0x281   : > { %1375 = vrot.lane.b32.xlu0 %v1347_v53, %s2175_s16 }
 0x282   : > { %1363 = vrot.lane.b32.xlu1 %v1341_v49, %s2175_s16 }
 0x2e7   : > { %v1366_v51 = vpop.permute.xlu0 %1365 }
 0x2e8   : > { %1882 = vmatmul.mubr.msk.f32.vlgmr.msra.gmra.mxu1 %vm885_vm1, %v1366_v51 }
 0x2e9   : > { %1884 = vmatprep.mubr.msk.f32.mxu1 %vm2174_vm2, %v2173_v41 }
 0x2eb   : > { %v1368_v31 = vpop.permute.xlu1 %1367  ;;  %v1370_v56 = vpop.permute.xlu0 %1369 }
 0x2ec   : > { %1885 = vmatmul.mubr.msk.f32.gmra.mxu1 %vm885_vm1, %v1368_v31 }
 0x2ed   : > { %1887 = vmatprep.mubr.msk.f32.mxu1 %vm2174_vm2, %v2173_v41 }
 0x2ef   : > { %v1374_v47 = vpop.permute.xlu0 %1373 }
 0x2f0   : > { %v1372_v57 = vpop.permute.xlu1 %1371  ;;  %1888 = vmatmul.mubr.msk.f32.gmra.mxu1 %vm885_vm1, %v1370_v56 }
 0x2f1   : > { %1890 = vmatprep.mubr.msk.f32.mxu1 %vm2174_vm2, %v2173_v41 }
 0x2f3   : > { %v1376_v50 = vpop.permute.xlu0 %1375 }
 0x2f4   : > { %v1364_v32 = vpop.permute.xlu1 %1363  ;;  %1891 = vmatmul.mubr.msk.f32.gmra.mxu1 %vm885_vm1, %v1372_v57 }
 0x2f5   : > { %1879 = vmatmul.mubr.msk.f32.vlgmr.msra.gmra.mxu0 %vm885_vm1, %v1364_v32  ;;  %1893 = vmatprep.mubr.msk.f32.mxu1 %vm2174_vm2, %v2173_v41 }
 0x2f8   : > { %1894 = vmatmul.mubr.msk.f32.gmra.mxu1 %vm885_vm1, %v1374_v47 }
 0x2f9   : > { %1896 = vmatprep.mubr.msk.f32.mxu1 %vm2174_vm2, %v2173_v41 }
 0x2fc   : > { %1897 = vmatmul.mubr.msk.f32.gmra.mxu1 %vm885_vm1, %v1376_v50 }
 0x3a8   : > { %v1462_v59 = vpop.f32.mrf.mxu1 }
 0x3a9   : > { %v1463_v21 = vadd.f32 %v1677_v58, %v1462_v59 }
 0x3aa   : > { %v1883_v13 = vpop.f32.mrf.mxu1 }
 0x3ab   : > { %1492 = vst [vmem:[%s2646_s7 + $0x8] sm:$0xff] %v1463_v21 }
 0x3ac   : > { %v1467_v15 = vpop.f32.mrf.mxu1 }
 0x3ad   : > { %v1468_v23 = vadd.f32 %v1677_v58, %v1467_v15 }
 0x3ae   : > { %v1886_v9 = vpop.f32.mrf.mxu1 }
 0x3af   : > { %1493 = vst [vmem:[%s2646_s7 + $0x10] sm:$0xff] %v1468_v23 }
 0x3b0   : > { %v1472_v52 = vpop.f32.mrf.mxu1 }
 0x3b1   : > { %v1473_v54 = vadd.f32 %v1677_v58, %v1472_v52 }
 0x3b2   : > { %v1889_v37 = vpop.f32.mrf.mxu1 }
 0x3b3   : > { %1494 = vst [vmem:[%s2646_s7 + $0x18] sm:$0xff] %v1473_v54 }
 0x3b4   : > { %v1477_v61 = vpop.f32.mrf.mxu1 }
 0x3b5   : > { %v1457_v60 = vpop.f32.mrf.mxu0  ;;  %v1478_v63 = vadd.f32 %v1677_v58, %v1477_v61 }
 0x3b6   : > { %v1458_v62 = vadd.f32 %v1677_v58, %v1457_v60  ;;  %v1892_v17 = vpop.f32.mrf.mxu1 }
 0x3b7   : > { %v1880_v16 = vpop.f32.mrf.mxu0  ;;  %1495 = vst [vmem:[%s2646_s7 + $0x20] sm:$0xff] %v1478_v63 }
 0x3b8   : > { %1491 = vst [vmem:[%s2646_s7] sm:$0xff] %v1458_v62  ;;  %v1482_v18 = vpop.f32.mrf.mxu1 }
 0x3b9   : > { %v1483_v19 = vadd.f32 %v1677_v58, %v1482_v18 }
 0x3ba   : > { %v1895_v24 = vpop.f32.mrf.mxu1 }
 0x3bb   : > { %1496 = vst [vmem:[%s2646_s7 + $0x28] sm:$0xff] %v1483_v19  ;;  %1505 = sbr.rel (!%p2253_p9) target bundleno = 987 (0x3db), region = 48 }
 0x3bc   : > { %v1487_v25 = vpop.f32.mrf.mxu1 }
 0x3bd   : > { %v1488_v26 = vadd.f32 %v1677_v58, %v1487_v25 }
 0x3be   : > { %v1898_v27 = vpop.f32.mrf.mxu1 }
 0x3bf   : > { %1497 = vst [vmem:[%s2646_s7 + $0x30] sm:$0xff] %v1488_v26 }
 0x3c0   : > { %s2738_s15 = smov (!%p1508_p6, %s1507_s15), 7 }
 0x3c1   : > { %s2659_s23 = sshll.u32 %s2738_s15, 7 }
 0x3c2   : > { %s1512_s9 = ssub.s32 896, %s2659_s23 }
 0x3c3   : > { %1513 = vsyncadd %s1499_s10, %s1512_s9  ;;  %p1686_p10 = scmp.ne.s32.totalorder %s2659_s23, 0  ;;  %s1692_s29 = smul.u32 896, %s2230_s22 }
 0x3c4   : > { %s1518_s11 = sshll.u32 %s2646_s7, 4  ;;  %s2176_s16 = smov [#allocation5]   ;;  %s2672_s11 = int_to_ptr.vmem [resolvable:$true] %s1518_s11 }
 0x3c5   : > { %s2670_s14 = scalar_lea.hbm %s2722_s5, %s1692_s29  ;;  %s2102_s28 = scalar_lea.vmem %s2672_s11, %s2659_s23 }
 0x3c6   : > { %p2103_p9 = scmp.ne.s32.totalorder %s2672_s11, %s2102_s28  ;;  %s2106_s17 = sshll.u32 %s2176_s16, 4  ;;  %s2107_s17 = int_to_ptr.vmem [resolvable:$false] %s2106_s17 }
 0x3c7   : > { %s2108_s22 = scalar_lea.vmem %s2107_s17, 1792  ;;  %p2109_p7 = scmp.lt.s32.totalorder %s2672_s11, %s2107_s17 }
 0x3c8   : > { %p2104_p11 = pnand %p2103_p9, %p1686_p10  ;;  %p2110_p8 = scmp.lt.s32.totalorder %s2108_s22, %s2102_s28 }
 0x3ca   : > { %p2105_p13 = pneg %p2104_p11  ;;  %p2111_p12 = por %p2110_p8, %p2109_p7 }
 0x3cc   : > { %p2112_p0 = pnand %p2111_p12, %p2105_p13 }
 0x3ce   : > { %2115 = shalt.err (!%p2112_p0)
}
 0x3cf   : > { %s2116_s25 = scalar_lea.hbm %s2670_s14, %s2659_s23  ;;  %s2120_s12 = scalar_lea.hbm %s2722_s5, 1664 }
 0x3d0   : > { %p2117_p1 = scmp.ne.s32.totalorder %s2670_s14, %s2116_s25  ;;  %p2121_p4 = scmp.lt.s32.totalorder %s2670_s14, %s2722_s5 }
 0x3d1   : > { %p2122_p5 = scmp.lt.s32.totalorder %s2120_s12, %s2116_s25 }
 0x3d2   : > { %p2118_p3 = pnand %p2117_p1, %p1686_p10 }
 0x3d3   : > { %p2123_p6 = por %p2122_p5, %p2121_p4 }
 0x3d4   : > { %p2119_p2 = pneg %p2118_p3 }
 0x3d6   : > { %p2124_p9 = pnand %p2123_p6, %p2119_p2 }
 0x3d8   : > { %2127 = shalt.err (!%p2124_p9)
}
 0x3d9   : > { %s2177_s29 = smov 128   ;;  %s2178_s8 = smov 8  }
 0x3da   : > { %1524 = dma.vmem_to_hbm [thread:$0]  (%p1686_p10), %s2672_s11, %s2659_s23, %s2670_s14, %s1499_s10, %s2177_s29, %s2177_s29, %s2178_s8  }
 0x3db PF: > { %s1533_s13 = sand.u32 1, %s2154_s18   ;;  %p2729_p11 = scmp.ne.s32.totalorder %s2726_s30, 0 }
 0x3dc   : > { %p2730_p13 = scmp.ge.s32.totalorder %s2166_s21, 2  ;;  %s1534_s28 = scalar_lea.sflag [#allocation4], %s1533_s13 }
 0x3de   : > { %p1909_p7 = pnand %p2730_p13, %p2729_p11 }
 0x3e0   : > { %p1910_p8 = pneg %p1909_p7 }
 0x3e2   : > { %2149 = dma.done.wait (%p1910_p8), %s1534_s28, 896  }
 0x3e3   : > { %2151 = vsyncadd (%p1910_p8), %s1534_s28, 4294966400  ;;  %p18_p12 = scmp.ge.s32.totalorder %s2234_s24, 4   ;;  %s2731_s18 = smov %s2158_s19 }
 0x3e4   : > { %s2732_s19 = smov %s2162_s20  ;;  %s2733_s20 = smov %s2246_s27 }
 0x3e5   : > { %s2734_s21 = smov %s2234_s24  ;;  %20 = sbr.rel (!%p18_p12) target bundleno = 5 (0x5), region = 85 }
 0x3ea   :  { %1539 = vsyncpa [#allocation3], 1 }
 0x3eb   :  { %1541 = vsyncpa [#allocation3 + $0x1], 1 }
 0x3ec   :  { %1542 = vsyncpa [#allocation4], 1 }
 0x3ed   :  { %1544 = vsyncpa [#allocation4 + $0x1], 1 }

</bundles_post_ra>
